<compile_context>
chip_gen: v6e
topology: v6e:2x2x1
jax: 0.10.0
libtpu: 0.0.40
codegen_flags: <defaults>
</compile_context>

<pallas_src>
import math

import jax
import jax.numpy as jnp
from jax.experimental import pallas as pl
from jax.experimental.pallas import tpu as pltpu

STATE_DIM = 2
ACTION_DIM = 3
H1 = 128
H2 = 64
TB_MAX = 4096                     # batch tile cap (rows); ~16-22 MiB of VMEM
NEG_SLOPE = 0.01                  # nn.LeakyReLU default negative_slope
VMEM_LIMIT_BYTES = 48 * 1024 * 1024   # explicit scoped-VMEM ceiling (< v7x 64 MiB)


def _leaky_relu(x):
    return jnp.where(x > 0, x, NEG_SLOPE * x)


def _round_up(n, m):
    return ((n + m - 1) // m) * m


def qnet_kernel(x_ref, w1_ref, b1_ref, w2_ref, b2_ref, w3_ref, b3_ref, o_ref):
    # x_ref: (TB, STATE_DIM)   w1: (STATE_DIM, H1)  b1: (1, H1)
    # w2: (H1, H2)  b2: (1, H2)  w3: (H2, ACTION_DIM)  b3: (1, ACTION_DIM)
    # o_ref: (TB, ACTION_DIM)  -- narrow HBM writeback (12 B/row, not 512).
    x = x_ref[...]

    # Layer 1: K=STATE_DIM(=2) contraction as VPU broadcast FMAs (skip MXU).
    h1 = b1_ref[...]                                   # (1, H1) broadcasts up
    for k in range(STATE_DIM):                         # static, tiny unroll
        h1 = h1 + x[:, k:k + 1] * w1_ref[k:k + 1, :]   # (TB,1)*(1,H1)
    h1 = _leaky_relu(h1)

    # Layer 2: dominant 128x64 matmul on the MXU, f32 accumulation.
    h2 = jnp.dot(h1, w2_ref[...], preferred_element_type=jnp.float32)
    h2 = _leaky_relu(h2 + b2_ref[...])

    # Layer 3: 64x3 matmul; narrow (masked) store -- cheap, hidden under DMA.
    out = jnp.dot(h2, w3_ref[...], preferred_element_type=jnp.float32)
    o_ref[...] = (out + b3_ref[...]).astype(o_ref.dtype)


def qnetwork_forward(x, params):
    """x: [B, STATE_DIM] float32 -> [B, ACTION_DIM] float32."""
    w1, b1, w2, b2, w3, b3 = params
    B = x.shape[0]

    # Batch tile: as large as possible to amortize the ~0.35us per-step
    # overhead, but clamped to ceil(B/2) (multiple of 8 sublanes) so the
    # parallel grid has >=2 steps and v7x's second TensorCore gets work.
    TB = min(TB_MAX, max(8, _round_up(pl.cdiv(B, 2), 8)))
    grid = (pl.cdiv(B, TB),)          # ragged tail handled by Pallas clipping

    const = lambda i: (0, 0)          # weights/biases resident across steps
    in_specs = [
        pl.BlockSpec((TB, STATE_DIM), lambda i: (i, 0)),
        pl.BlockSpec((STATE_DIM, H1), const),
        pl.BlockSpec((1, H1), const),
        pl.BlockSpec((H1, H2), const),
        pl.BlockSpec((1, H2), const),
        pl.BlockSpec((H2, ACTION_DIM), const),
        pl.BlockSpec((1, ACTION_DIM), const),
    ]
    out_specs = pl.BlockSpec((TB, ACTION_DIM), lambda i: (i, 0))

    flops = 2 * B * (STATE_DIM * H1 + H1 * H2 + H2 * ACTION_DIM)
    weight_bytes = 4 * (STATE_DIM * H1 + H1 + H1 * H2 + H2
                        + H2 * ACTION_DIM + ACTION_DIM)
    bytes_accessed = B * (STATE_DIM + ACTION_DIM) * 4 + weight_bytes

    out = pl.pallas_call(
        qnet_kernel,
        out_shape=jax.ShapeDtypeStruct((B, ACTION_DIM), jnp.float32),
        grid=grid,
        in_specs=in_specs,
        out_specs=out_specs,
        compiler_params=pltpu.CompilerParams(
            dimension_semantics=("parallel",),
            vmem_limit_bytes=VMEM_LIMIT_BYTES),
        cost_estimate=pl.CostEstimate(
            flops=flops, transcendentals=0, bytes_accessed=bytes_accessed),
    )(x, w1, b1, w2, b2, w3, b3)

    return out


def init_params(key):
    """Deterministic synthetic parameters (PyTorch-like uniform fan-in init)."""
    ks = jax.random.split(key, 6)

    def lin(kw, kb, fan_in, fan_out):
        bound = 1.0 / math.sqrt(fan_in)
        w = jax.random.uniform(kw, (fan_in, fan_out), jnp.float32, -bound, bound)
        b = jax.random.uniform(kb, (1, fan_out), jnp.float32, -bound, bound)
        return w, b

    w1, b1 = lin(ks[0], ks[1], STATE_DIM, H1)
    w2, b2 = lin(ks[2], ks[3], H1, H2)
    w3, b3 = lin(ks[4], ks[5], H2, ACTION_DIM)
    return (w1, b1, w2, b2, w3, b3)


def reference_forward(x, params):
    """Plain-JAX reference for correctness checking."""
    w1, b1, w2, b2, w3, b3 = params
    h = _leaky_relu(x @ w1 + b1)
    h = _leaky_relu(h @ w2 + b2)
    return h @ w3 + b3


if __name__ == "__main__":
    key = jax.random.PRNGKey(0)
    kx, kp = jax.random.split(key)

    B = 8  # small batch
    x = jax.random.normal(kx, (B, STATE_DIM), dtype=jnp.float32)
    params = init_params(kp)

    out = qnetwork_forward(x, params)
    out = jax.block_until_ready(out)

    ref = reference_forward(x, params)
    assert out.shape == (B, ACTION_DIM)
    assert jnp.allclose(out, ref, atol=1e-5, rtol=1e-5), "mismatch vs reference"

    print("KERNEL_OK")
</pallas_src>

<mosaic_0001>
module attributes {stable_mosaic.version = 11 : i64} {
  func.func @qnet_kernel(%arg0: i32, %arg1: memref<8x2xf32, #tpu.memory_space<vmem>>, %arg2: memref<2x128xf32, #tpu.memory_space<vmem>>, %arg3: memref<1x128xf32, #tpu.memory_space<vmem>>, %arg4: memref<128x64xf32, #tpu.memory_space<vmem>>, %arg5: memref<1x64xf32, #tpu.memory_space<vmem>>, %arg6: memref<64x3xf32, #tpu.memory_space<vmem>>, %arg7: memref<1x3xf32, #tpu.memory_space<vmem>>, %arg8: memref<8x3xf32, #tpu.memory_space<vmem>>) attributes {dimension_semantics = [#tpu.dimension_semantics<parallel>], iteration_bounds = array<i64: 1>, scalar_prefetch = 0 : i64, scratch_operands = 0 : i64, tpu.core_type = #tpu.core_type<tc>, window_params = [{transform_indices = @transform_0, window_bounds = array<i64: 8, 2>}, {pipeline_mode = #tpu.pipeline_mode<synchronous>, transform_indices = @transform_1, window_bounds = array<i64: 2, 128>}, {pipeline_mode = #tpu.pipeline_mode<synchronous>, transform_indices = @transform_2, window_bounds = array<i64: 1, 128>}, {pipeline_mode = #tpu.pipeline_mode<synchronous>, transform_indices = @transform_3, window_bounds = array<i64: 128, 64>}, {pipeline_mode = #tpu.pipeline_mode<synchronous>, transform_indices = @transform_4, window_bounds = array<i64: 1, 64>}, {pipeline_mode = #tpu.pipeline_mode<synchronous>, transform_indices = @transform_5, window_bounds = array<i64: 64, 3>}, {pipeline_mode = #tpu.pipeline_mode<synchronous>, transform_indices = @transform_6, window_bounds = array<i64: 1, 3>}, {transform_indices = @transform_7, window_bounds = array<i64: 8, 3>}]} {
    %c0 = arith.constant 0 : index
    %c0_0 = arith.constant 0 : index
    %0 = vector.load %arg1[%c0, %c0_0] : memref<8x2xf32, #tpu.memory_space<vmem>>, vector<8x2xf32>
    %c0_1 = arith.constant 0 : index
    %c0_2 = arith.constant 0 : index
    %1 = vector.load %arg3[%c0_1, %c0_2] : memref<1x128xf32, #tpu.memory_space<vmem>>, vector<1x128xf32>
    %2 = vector.extract_strided_slice %0 {offsets = [0, 0], sizes = [8, 1], strides = [1, 1]} : vector<8x2xf32> to vector<8x1xf32>
    %c0_3 = arith.constant 0 : index
    %c0_4 = arith.constant 0 : index
    %3 = vector.load %arg2[%c0_3, %c0_4] : memref<2x128xf32, #tpu.memory_space<vmem>>, vector<1x128xf32>
    %4 = vector.broadcast %2 : vector<8x1xf32> to vector<8x128xf32>
    %5 = vector.broadcast %3 : vector<1x128xf32> to vector<8x128xf32>
    %6 = arith.mulf %4, %5 : vector<8x128xf32>
    %7 = vector.broadcast %1 : vector<1x128xf32> to vector<8x128xf32>
    %8 = arith.addf %7, %6 : vector<8x128xf32>
    %9 = vector.extract_strided_slice %0 {offsets = [0, 1], sizes = [8, 1], strides = [1, 1]} : vector<8x2xf32> to vector<8x1xf32>
    %c1 = arith.constant 1 : index
    %c0_5 = arith.constant 0 : index
    %10 = vector.load %arg2[%c1, %c0_5] : memref<2x128xf32, #tpu.memory_space<vmem>>, vector<1x128xf32>
    %11 = vector.broadcast %9 : vector<8x1xf32> to vector<8x128xf32>
    %12 = vector.broadcast %10 : vector<1x128xf32> to vector<8x128xf32>
    %13 = arith.mulf %11, %12 : vector<8x128xf32>
    %14 = arith.addf %8, %13 : vector<8x128xf32>
    %cst = arith.constant 0.000000e+00 : f32
    %15 = vector.broadcast %cst : f32 to vector<8x128xf32>
    %16 = arith.cmpf ogt, %14, %15 : vector<8x128xf32>
    %cst_6 = arith.constant 0.00999999977 : f32
    %17 = vector.broadcast %cst_6 : f32 to vector<8x128xf32>
    %18 = arith.mulf %17, %14 : vector<8x128xf32>
    %19 = arith.select %16, %14, %18 : vector<8x128xi1>, vector<8x128xf32>
    %c0_7 = arith.constant 0 : index
    %c0_8 = arith.constant 0 : index
    %20 = vector.load %arg4[%c0_7, %c0_8] : memref<128x64xf32, #tpu.memory_space<vmem>>, vector<128x64xf32>
    %cst_9 = arith.constant dense<0.000000e+00> : vector<8x64xf32>
    %21 = tpu.matmul %19, %20, %cst_9 {dimension_numbers = #tpu.dot_dimension_numbers<[1], [0], [0], [1], [0, 0, 1, 1], [], []>} : vector<8x128xf32>, vector<128x64xf32>, vector<8x64xf32> -> vector<8x64xf32>
    %c0_10 = arith.constant 0 : index
    %c0_11 = arith.constant 0 : index
    %22 = vector.load %arg5[%c0_10, %c0_11] : memref<1x64xf32, #tpu.memory_space<vmem>>, vector<1x64xf32>
    %23 = vector.broadcast %22 : vector<1x64xf32> to vector<8x64xf32>
    %24 = arith.addf %21, %23 : vector<8x64xf32>
    %cst_12 = arith.constant 0.000000e+00 : f32
    %25 = vector.broadcast %cst_12 : f32 to vector<8x64xf32>
    %26 = arith.cmpf ogt, %24, %25 : vector<8x64xf32>
    %cst_13 = arith.constant 0.00999999977 : f32
    %27 = vector.broadcast %cst_13 : f32 to vector<8x64xf32>
    %28 = arith.mulf %27, %24 : vector<8x64xf32>
    %29 = arith.select %26, %24, %28 : vector<8x64xi1>, vector<8x64xf32>
    %c0_14 = arith.constant 0 : index
    %c0_15 = arith.constant 0 : index
    %30 = vector.load %arg6[%c0_14, %c0_15] : memref<64x3xf32, #tpu.memory_space<vmem>>, vector<64x3xf32>
    %cst_16 = arith.constant dense<0.000000e+00> : vector<8x3xf32>
    %31 = tpu.matmul %29, %30, %cst_16 {dimension_numbers = #tpu.dot_dimension_numbers<[1], [0], [0], [1], [0, 0, 1, 1], [], []>} : vector<8x64xf32>, vector<64x3xf32>, vector<8x3xf32> -> vector<8x3xf32>
    %c0_17 = arith.constant 0 : index
    %c0_18 = arith.constant 0 : index
    %32 = vector.load %arg7[%c0_17, %c0_18] : memref<1x3xf32, #tpu.memory_space<vmem>>, vector<1x3xf32>
    %33 = vector.broadcast %32 : vector<1x3xf32> to vector<8x3xf32>
    %34 = arith.addf %31, %33 : vector<8x3xf32>
    %c0_19 = arith.constant 0 : index
    %c0_20 = arith.constant 0 : index
    %35 = vector.load %arg8[%c0_19, %c0_20] : memref<8x3xf32, #tpu.memory_space<vmem>>, vector<8x3xf32>
    tpu.vector_store %arg8[%c0_19, %c0_20], %34 {strides = array<i32>} : memref<8x3xf32, #tpu.memory_space<vmem>>, vector<8x3xf32>,
    return
  }
  func.func @transform_0(%arg0: i32) -> (i32, i32) {
    %c0_i32 = arith.constant 0 : i32
    %c0_i32_0 = arith.constant 0 : i32
    return %arg0, %c0_i32 : i32, i32
  }
  func.func @transform_1(%arg0: i32) -> (i32, i32) {
    %c0_i32 = arith.constant 0 : i32
    %c0_i32_0 = arith.constant 0 : i32
    %c0_i32_1 = arith.constant 0 : i32
    return %c0_i32, %c0_i32_0 : i32, i32
  }
  func.func @transform_2(%arg0: i32) -> (i32, i32) {
    %c0_i32 = arith.constant 0 : i32
    %c0_i32_0 = arith.constant 0 : i32
    %c0_i32_1 = arith.constant 0 : i32
    return %c0_i32, %c0_i32_0 : i32, i32
  }
  func.func @transform_3(%arg0: i32) -> (i32, i32) {
    %c0_i32 = arith.constant 0 : i32
    %c0_i32_0 = arith.constant 0 : i32
    %c0_i32_1 = arith.constant 0 : i32
    return %c0_i32, %c0_i32_0 : i32, i32
  }
  func.func @transform_4(%arg0: i32) -> (i32, i32) {
    %c0_i32 = arith.constant 0 : i32
    %c0_i32_0 = arith.constant 0 : i32
    %c0_i32_1 = arith.constant 0 : i32
    return %c0_i32, %c0_i32_0 : i32, i32
  }
  func.func @transform_5(%arg0: i32) -> (i32, i32) {
    %c0_i32 = arith.constant 0 : i32
    %c0_i32_0 = arith.constant 0 : i32
    %c0_i32_1 = arith.constant 0 : i32
    return %c0_i32, %c0_i32_0 : i32, i32
  }
  func.func @transform_6(%arg0: i32) -> (i32, i32) {
    %c0_i32 = arith.constant 0 : i32
    %c0_i32_0 = arith.constant 0 : i32
    %c0_i32_1 = arith.constant 0 : i32
    return %c0_i32, %c0_i32_0 : i32, i32
  }
  func.func @transform_7(%arg0: i32) -> (i32, i32) {
    %c0_i32 = arith.constant 0 : i32
    %c0_i32_0 = arith.constant 0 : i32
    return %arg0, %c0_i32 : i32, i32
  }
}

</mosaic_0001>

<bundles_post_ra>
// kernel: tpu_custom_call.1
= control target key start
LH: loop header
LB: loop body
LE: loop exit
PB: predicated region body
PF: predicated region fallthrough
CT: control target
= control target key end

     0   :  { %v343_v0 = vmov 0   ;;  %v344_v2 = vmov 0.0   ;;  %v345_v7 = vmov 1   ;;  %vm346_vm0 = vmmov 0   ;;  %s506_s0 = inlined_call_operand.vmem [shape: f32[8,2], index: 0, kind: input, shape index: {}]   ;;  %s507_s3 = inlined_call_operand.vmem [shape: f32[128,64], index: 3, kind: input, shape index: {}]   ;;  %s508_s5 = inlined_call_operand.vmem [shape: f32[64,3], index: 5, kind: input, shape index: {}]   ;;  %s509_s1 = inlined_call_operand.vmem [shape: f32[2,128], index: 1, kind: input, shape index: {}]   ;;  %s510_s2 = inlined_call_operand.vmem [shape: f32[1,128], index: 2, kind: input, shape index: {}]   ;;  %s511_s4 = inlined_call_operand.vmem [shape: f32[1,64], index: 4, kind: input, shape index: {}]   ;;  %s512_s6 = inlined_call_operand.vmem [shape: f32[1,3], index: 6, kind: input, shape index: {}]   ;;  %s513_s7 = inlined_call_operand.vmem [shape: f32[8,3], index: 7, kind: output, shape index: {}]  }
   0x1   :  { %341 = vset.pattern.permute.xlu0 %v343_v0  ;;  %v26_v1 = vld [vmem:[%s506_s0] sm:$0xff]  ;;  %283 = vmatprep.subr.mxu0 %v344_v2  ;;  %v75_v3 = vld [vmem:[%s507_s3 + $0x78] sm:$0xff]  ;;  %v74_v4 = vld [vmem:[%s507_s3 + $0x70] sm:$0xff]  ;;  %vm171_vm3 = vcmask 523264   ;;  %vm245_vm4 = vcmask 23552  }
   0x2   :  { %31 = vperm.xlu0 %341, %v26_v1   ;;  %284 = vmatpush3.msra.mxu0 %v75_v3  ;;  %v73_v5 = vld [vmem:[%s507_s3 + $0x68] sm:$0xff]  ;;  %v72_v6 = vld [vmem:[%s507_s3 + $0x60] sm:$0xff]  ;;  %v71_v8 = vld [vmem:[%s507_s3 + $0x58] sm:$0xff] }
   0x3   :  { %285 = vmatprep.subr.mxu0 %v344_v2  ;;  %318 = vmatprep.subr.mxu1 %v344_v2  ;;  %v70_v9 = vld [vmem:[%s507_s3 + $0x50] sm:$0xff]  ;;  %v69_v10 = vld [vmem:[%s507_s3 + $0x48] sm:$0xff]  ;;  %v163_v11 = vld [vmem:[%s508_s5 + $0x38] sm:$0xff] }
   0x4   :  { %286 = vmatpush3.msra.mxu0 %v74_v4  ;;  %315 = vmatprep.mubr.msk.f32.mxu0 %vm346_vm0, %v344_v2  ;;  %v162_v12 = vld [vmem:[%s508_s5 + $0x30] sm:$0xff]  ;;  %v68_v13 = vld [vmem:[%s507_s3 + $0x40] sm:$0xff]  ;;  %v161_v14 = vld [vmem:[%s508_s5 + $0x28] sm:$0xff] }
   0x5   :  { %287 = vmatprep.subr.mxu0 %v344_v2  ;;  %334 = vmatprep.mubr.msk.f32.mxu1 %vm346_vm0, %v344_v2  ;;  %v67_v15 = vld [vmem:[%s507_s3 + $0x38] sm:$0xff]  ;;  %v160_v16 = vld [vmem:[%s508_s5 + $0x20] sm:$0xff]  ;;  %v66_v17 = vld [vmem:[%s507_s3 + $0x30] sm:$0xff] }
   0x6   :  { %342 = vset.pattern.permute.xlu0 %v345_v7  ;;  %288 = vmatpush3.msra.mxu0 %v73_v5  ;;  %v159_v18 = vld [vmem:[%s508_s5 + $0x18] sm:$0xff]  ;;  %v65_v19 = vld [vmem:[%s507_s3 + $0x28] sm:$0xff]  ;;  %v64_v20 = vld [vmem:[%s507_s3 + $0x20] sm:$0xff] }
   0x7   :  { %48 = vperm.xlu0 %342, %v26_v1   ;;  %289 = vmatprep.subr.mxu0 %v344_v2  ;;  %v63_v21 = vld [vmem:[%s507_s3 + $0x18] sm:$0xff]  ;;  %v62_v22 = vld [vmem:[%s507_s3 + $0x10] sm:$0xff]  ;;  %v61_v23 = vld [vmem:[%s507_s3 + $0x8] sm:$0xff] }
   0x8   :  { %290 = vmatpush3.msra.mxu0 %v72_v6  ;;  %319 = vmatpush3.msra.mxu1 %v163_v11  ;;  %v60_v24 = vld [vmem:[%s507_s3] sm:$0xff]  ;;  %v158_v36 = vld [vmem:[%s508_s5 + $0x10] sm:$0xff]  ;;  %v157_v37 = vld [vmem:[%s508_s5 + $0x8] sm:$0xff] }
   0x9   :  { %291 = vmatprep.subr.mxu0 %v344_v2  ;;  %320 = vmatprep.subr.mxu1 %v344_v2  ;;  %v251_v25 = vld [vmem:[%s509_s1] ss:$0 sm:$0xff]  ;;  %v253_v29 = vld [vmem:[%s509_s1 + $0x1] ss:$0 sm:$0xff] }
   0xa   :  { %292 = vmatpush3.msra.mxu0 %v71_v8  ;;  %321 = vmatpush3.msra.mxu1 %v162_v12  ;;  %v252_v28 = vld [vmem:[%s510_s2] ss:$0 sm:$0xff] }
   0xb   :  { %293 = vmatprep.subr.mxu0 %v344_v2  ;;  %322 = vmatprep.subr.mxu1 %v344_v2  ;;  %v156_v38 = vld [vmem:[%s508_s5] sm:$0xff] }
   0xc   :  { %294 = vmatpush3.msra.mxu0 %v70_v9  ;;  %323 = vmatpush3.msra.mxu1 %v161_v14  ;;  %v254_v39 = vld [vmem:[%s511_s4] ss:$0 sm:$0xff] }
   0xd   :  { %295 = vmatprep.subr.mxu0 %v344_v2  ;;  %324 = vmatprep.subr.mxu1 %v344_v2  ;;  %v255_v45 = vld [vmem:[%s512_s6] ss:$0 sm:$0xff] }
   0xe   :  { %296 = vmatpush3.msra.mxu0 %v69_v10  ;;  %325 = vmatpush3.msra.mxu1 %v160_v16 }
   0xf   :  { %297 = vmatprep.subr.mxu0 %v344_v2  ;;  %326 = vmatprep.subr.mxu1 %v344_v2 }
  0x10   :  { %298 = vmatpush3.msra.mxu0 %v68_v13  ;;  %327 = vmatpush3.msra.mxu1 %v159_v18 }
  0x11   :  { %299 = vmatprep.subr.mxu0 %v344_v2  ;;  %328 = vmatprep.subr.mxu1 %v344_v2 }
  0x12   :  { %300 = vmatpush3.msra.mxu0 %v67_v15  ;;  %329 = vmatpush3.msra.mxu1 %v158_v36 }
  0x13   :  { %301 = vmatprep.subr.mxu0 %v344_v2  ;;  %330 = vmatprep.subr.mxu1 %v344_v2 }
  0x14   :  { %302 = vmatpush3.msra.mxu0 %v66_v17  ;;  %331 = vmatpush3.msra.mxu1 %v157_v37 }
  0x15   :  { %303 = vmatprep.subr.mxu0 %v344_v2  ;;  %332 = vmatprep.subr.mxu1 %v344_v2 }
  0x16   :  { %304 = vmatpush3.msra.mxu0 %v65_v19  ;;  %333 = vmatpush3.msra.mxu1 %v156_v38 }
  0x17   :  { %305 = vmatprep.subr.mxu0 %v344_v2 }
  0x18   :  { %306 = vmatpush3.msra.mxu0 %v64_v20 }
  0x19   :  { %307 = vmatprep.subr.mxu0 %v344_v2 }
  0x1a   :  { %308 = vmatpush3.msra.mxu0 %v63_v21 }
  0x1b   :  { %309 = vmatprep.subr.mxu0 %v344_v2 }
  0x1c   :  { %310 = vmatpush3.msra.mxu0 %v62_v22 }
  0x1d   :  { %311 = vmatprep.subr.mxu0 %v344_v2 }
  0x1e   :  { %312 = vmatpush3.msra.mxu0 %v61_v23 }
  0x1f   :  { %313 = vmatprep.subr.mxu0 %v344_v2 }
  0x20   :  { %314 = vmatpush3.msra.mxu0 %v60_v24 }
  0x7d   :  { %v32_v26 = vpop.permute.xlu0 %31 }
  0x7e   :  { %v38_v27 = vmul.f32 %v251_v25, %v32_v26 }
  0x80   :  { %v45_v31 = vadd.f32 %v252_v28, %v38_v27 }
  0x82   :  { %v49_v30 = vpop.permute.xlu0 %48 }
  0x83   :  { %v55_v32 = vmul.f32 %v253_v29, %v49_v30 }
  0x85   :  { %v56_v33 = vadd.f32 %v55_v32, %v45_v31 }
  0x87   :  { %vm57_vm1 = vcmp.gt.f32.partialorder %v56_v33, 0.0  ;;  %v58_v34 = vmul.f32 0.01, %v56_v33 }
  0x89   :  { %v59_v35 = vsel %vm57_vm1, %v56_v33, %v58_v34 }
  0x8a   :  { %316 = vmatmul.mubr.f32.vlgmr.msra.gmra.mxu0 %v59_v35 }
 0x14a   :  { %v149_v40 = vpop.f32.mrf.mxu0 }
 0x14b   :  { %v150_v41 = vadd.f32 %v254_v39, %v149_v40 }
 0x14c   :  { %v317_v42 = vpop.f32.mrf.mxu0 }
 0x14d   :  { %vm153_vm2 = vcmp.gt.f32.partialorder %v150_v41, 0.0  ;;  %v154_v43 = vmul.f32 0.01, %v150_v41 }
 0x14f   :  { %v155_v44 = vsel %vm153_vm2, %v150_v41, %v154_v43 }
 0x150   :  { %335 = vmatmul.mubr.msk.f32.vlgmr.msra.gmra.mxu1 %vm171_vm3, %v155_v44 }
 0x210   :  { %v241_v46 = vpop.f32.mrf.mxu1 }
 0x211   :  { %v242_v47 = vadd.f32 %v255_v45, %v241_v46 }
 0x212   :  { %v336_v48 = vpop.f32.mrf.mxu1 }
 0x213   :  { %246 = vst.msk [vmem:[%s513_s7] sm:$0xff] %vm245_vm4, %v242_v47 }

</bundles_post_ra>
